<compile_context>
chip_gen: v7x
topology: tpu7x:2x2x1
jax: 0.10.0
libtpu: 0.0.40
codegen_flags: <defaults>
</compile_context>

<pallas_src>
import functools
import math

import numpy as np
import jax
import jax.numpy as jnp
from jax import lax
from jax.experimental import pallas as pl
from jax.experimental.pallas import tpu as pltpu


# ---------------------------------------------------------------------------
# Interpolation-matrix construction (host-side, cached compile-time constants)
# ---------------------------------------------------------------------------
@functools.lru_cache(maxsize=None)
def _bilinear_matrix_np(in_size: int, out_size: int):
    """Dense (out_size, in_size) float32 matrix reproducing
    F.interpolate(mode='bilinear', align_corners=False) along one axis."""
    scale = in_size / out_size
    dst = np.arange(out_size, dtype=np.float32)
    src = (dst + np.float32(0.5)) * np.float32(scale) - np.float32(0.5)
    src = np.maximum(src, 0.0)                       # PyTorch clamps negatives to 0
    i0 = np.minimum(np.floor(src).astype(np.int64), in_size - 1)
    i1 = np.minimum(i0 + 1, in_size - 1)
    l1 = (src - i0).astype(np.float32)
    l0 = np.float32(1.0) - l1
    m = np.zeros((out_size, in_size), dtype=np.float32)
    r = np.arange(out_size)
    np.add.at(m, (r, i0), l0)
    np.add.at(m, (r, i1), l1)                        # duplicate indices sum to 1.0
    m.setflags(write=False)
    return m


def _lane(n: int) -> int:
    return ((n + 127) // 128) * 128


def _sublane(n: int) -> int:
    return ((n + 7) // 8) * 8


def _device_config():
    """Per-generation VMEM limit, batch-tile cap and core count."""
    try:
        kind = jax.devices()[0].device_kind.lower()
    except Exception:  # pragma: no cover - defensive
        kind = ""
    if "v7" in kind:                       # 64 MiB VMEM per TC, 2 TCs/chip
        return {"vmem": 48 << 20, "cap": 32, "two_cores": True}
    if "v6" in kind:                       # 128 MiB VMEM, 1 TC
        return {"vmem": 96 << 20, "cap": 64, "two_cores": False}
    if "v5" in kind:                       # v5e: also 128 MiB VMEM, 1 TC
        return {"vmem": 96 << 20, "cap": 64, "two_cores": False}
    return {"vmem": 48 << 20, "cap": 32, "two_cores": False}


def _plan_tiles(B, H_in, W_in, H_out, W_out, in_itemsize, out_itemsize,
                width_first, cfg):
    """Pick (TB, B_padded).

    TB is a divisor of B whenever possible (no batch-pad copy).  On v7x an
    even step count is preferred so both TensorCores get work; on single-TC
    chips the largest fitting tile (often the whole batch) is used.
    """
    in_bytes = 2 * _sublane(H_in) * _lane(W_in) * in_itemsize       # dbl-buffered
    out_bytes = 2 * _sublane(H_out) * _lane(W_out) * out_itemsize   # dbl-buffered
    tmp_bytes = 4 * (_sublane(H_in) * _lane(W_out) if width_first
                     else _sublane(H_out) * _lane(W_in))            # f32 scratch
    per_img = in_bytes + out_bytes + tmp_bytes
    # Resident weight matrices (their BlockSpecs are still double-buffered).
    wt_bytes = 2 * 4 * (_sublane(H_out) * _lane(H_in)
                        + _sublane(W_in) * _lane(W_out))
    budget = int(cfg["vmem"] * 0.75) - wt_bytes
    cap = max(1, min(cfg["cap"], budget // max(per_img, 1), B))

    def aligned(tb):
        # Sublane alignment of the collapsed (TB*H, W) blocks; only needed
        # when the block is not the whole array (nsteps > 1).
        return (tb * H_in) % 8 == 0 and (tb * H_out) % 8 == 0

    divisors = [d for d in range(1, B + 1) if B % d == 0 and d <= cap]
    valid = [d for d in divisors if d == B or aligned(d)]
    if valid:
        if cfg["two_cores"]:
            even = [d for d in valid if (B // d) % 2 == 0]
            multi = [d for d in valid if (B // d) >= 2]
            tb = max(even) if even else (max(multi) if multi else max(valid))
        else:
            tb = max(valid)
        return tb, B                                   # exact, no padding

    # Rare fallback: no aligned divisor fits VMEM — pad the batch to a
    # multiple of an aligned tile size.
    # TODO(synk): a ragged last tile handled with pl.when would avoid this copy.
    a = 8 // math.gcd(8, H_in)
    b = 8 // math.gcd(8, H_out)
    req = a * b // math.gcd(a, b)
    tb = max(req, (cap // req) * req)
    b_pad = ((B + tb - 1) // tb) * tb
    return tb, b_pad


# ---------------------------------------------------------------------------
# Kernel
# ---------------------------------------------------------------------------
def _resize_kernel(wh_ref, wwt_ref, x_ref, o_ref, tmp_ref, *,
                   tb, h_in, h_out, width_first):
    # wh:  (H_out, H_in)            wwt: (W_in, W_out)
    # x:   (TB*H_in, W_in)          o:   (TB*H_out, W_out)
    # tmp: (TB*H_in, W_out) f32     [width-first]
    #      (TB*H_out, W_in) f32     [height-first]
    cdt = wwt_ref.dtype
    wh = wh_ref[...]
    hin_align = math.gcd(h_in, 8)
    hout_align = math.gcd(h_out, 8)

    def _hint(idx, m):
        return pl.multiple_of(idx, m) if m > 1 else idx

    if width_first:
        # Width pass: one large matmul, batch folded into M (M = TB*H_in).
        tmp_ref[...] = jnp.dot(x_ref[...].astype(cdt), wwt_ref[...],
                               preferred_element_type=jnp.float32)

        # Height pass: per-image (H_out,H_in)@(H_in,W_out) straight into o_ref.
        def body(b, carry):
            src = _hint(b * h_in, hin_align)
            dst = _hint(b * h_out, hout_align)
            img = tmp_ref[pl.ds(src, h_in), :].astype(cdt)
            res = jnp.dot(wh, img, preferred_element_type=jnp.float32)
            o_ref[pl.ds(dst, h_out), :] = res.astype(o_ref.dtype)
            return carry

        lax.fori_loop(0, tb, body, 0, unroll=min(8, tb))
    else:
        # Height pass first (size-reducing): per-image (H_out,H_in)@(H_in,W_in).
        def body(b, carry):
            src = _hint(b * h_in, hin_align)
            dst = _hint(b * h_out, hout_align)
            img = x_ref[pl.ds(src, h_in), :].astype(cdt)
            tmp_ref[pl.ds(dst, h_out), :] = jnp.dot(
                wh, img, preferred_element_type=jnp.float32)
            return carry

        lax.fori_loop(0, tb, body, 0, unroll=min(8, tb))

        # Width pass: one large matmul writing the whole output block.
        res = jnp.dot(tmp_ref[...].astype(cdt), wwt_ref[...],
                      preferred_element_type=jnp.float32)
        o_ref[...] = res.astype(o_ref.dtype)


# ---------------------------------------------------------------------------
# Wrapper
# ---------------------------------------------------------------------------
def bilinear_resize_pallas(x, target_size, compute_dtype=jnp.float32):
    """x: (N, C, H_in, W_in) -> (N, C, H_out, W_out); bilinear, half-pixel
    (matches F.interpolate(mode='bilinear', align_corners=False))."""
    N, C, H_in, W_in = x.shape
    H_out, W_out = target_size
    out_dtype = x.dtype
    B = N * C

    # Run the size-reducing pass first so the f32 intermediate is minimal.
    width_first = H_in * _lane(W_out) <= H_out * _lane(W_in)

    cfg = _device_config()
    TB, B_pad = _plan_tiles(
        B, H_in, W_in, H_out, W_out,
        in_itemsize=jnp.dtype(x.dtype).itemsize,
        out_itemsize=jnp.dtype(out_dtype).itemsize,
        width_first=width_first, cfg=cfg)
    nsteps = B_pad // TB

    # Interpolation matrices: host-built compile-time constants (cached).
    wh = jnp.asarray(_bilinear_matrix_np(H_in, H_out), dtype=compute_dtype)
    wwt = jnp.asarray(_bilinear_matrix_np(W_in, W_out).T, dtype=compute_dtype)

    # Free leading-dim collapse in the wrapper (no in-kernel relayout).
    x2d = x.reshape(B * H_in, W_in)
    if B_pad != B:                                    # rare fallback only
        x2d = jnp.pad(x2d, ((0, (B_pad - B) * H_in), (0, 0)))

    kernel = functools.partial(_resize_kernel, tb=TB, h_in=H_in, h_out=H_out,
                               width_first=width_first)
    tmp_shape = (TB * H_in, W_out) if width_first else (TB * H_out, W_in)

    out2d = pl.pallas_call(
        kernel,
        out_shape=jax.ShapeDtypeStruct((B_pad * H_out, W_out), out_dtype),
        grid_spec=pltpu.PrefetchScalarGridSpec(
            num_scalar_prefetch=0,
            grid=(nsteps,),
            in_specs=[
                # Constant index maps: weights are DMA'd once, stay resident.
                pl.BlockSpec((H_out, H_in), lambda b: (0, 0)),
                pl.BlockSpec((W_in, W_out), lambda b: (0, 0)),
                pl.BlockSpec((TB * H_in, W_in), lambda b: (b, 0)),
            ],
            out_specs=pl.BlockSpec((TB * H_out, W_out), lambda b: (b, 0)),
            scratch_shapes=[pltpu.VMEM(tmp_shape, jnp.float32)],
        ),
        compiler_params=pltpu.CompilerParams(
            dimension_semantics=("parallel",),
            vmem_limit_bytes=int(cfg["vmem"]),
        ),
    )(wh, wwt, x2d)

    if B_pad != B:
        out2d = out2d[: B * H_out]
    return out2d.reshape(N, C, H_out, W_out)


# ---------------------------------------------------------------------------
# Wrapped model
# ---------------------------------------------------------------------------
# TODO(synk): `original_model` is an arbitrary user-supplied nn.Module with no
# fixed definition; a deterministic stand-in (global-avg-pool + linear head)
# is used here so the full forward pass runs end to end.
def original_model_stub(x, w, b):
    pooled = jnp.mean(x, axis=(2, 3))          # (N, C)
    return pooled @ w + b                      # (N, num_classes)


def input_resizer_forward(x, target_size, head_w, head_b):
    resized = bilinear_resize_pallas(x, target_size)
    return original_model_stub(resized, head_w, head_b)


if __name__ == "__main__":
    key = jax.random.PRNGKey(0)
    kx, kw, kb = jax.random.split(key, 3)

    N, C, H, W = 2, 4, 16, 16
    target_size = (32, 32)          # small stand-in for the default (224, 224)
    num_classes = 8

    x = jax.random.normal(kx, (N, C, H, W), dtype=jnp.float32)
    head_w = jax.random.normal(kw, (C, num_classes), dtype=jnp.float32) * 0.1
    head_b = jax.random.normal(kb, (num_classes,), dtype=jnp.float32) * 0.1

    # --- Upscale (width-first path) -------------------------------------
    resized = bilinear_resize_pallas(x, target_size)
    jax.block_until_ready(resized)
    assert resized.shape == (N, C, *target_size)
    wh_ref = jnp.asarray(_bilinear_matrix_np(H, target_size[0]))
    ww_ref = jnp.asarray(_bilinear_matrix_np(W, target_size[1]))
    ref = jnp.einsum("oh,nchw,pw->ncop", wh_ref, x, ww_ref)
    assert jnp.allclose(resized, ref, rtol=5e-2, atol=5e-2), "upscale mismatch"

    # --- Downscale (height-first path) -----------------------------------
    x2 = jax.random.normal(kx, (N, C, 32, 48), dtype=jnp.float32)
    down = bilinear_resize_pallas(x2, (16, 24))
    jax.block_until_ready(down)
    assert down.shape == (N, C, 16, 24)
    wh2 = jnp.asarray(_bilinear_matrix_np(32, 16))
    ww2 = jnp.asarray(_bilinear_matrix_np(48, 24))
    ref2 = jnp.einsum("oh,nchw,pw->ncop", wh2, x2, ww2)
    assert jnp.allclose(down, ref2, rtol=5e-2, atol=5e-2), "downscale mismatch"

    # --- Full forward (resizer + stub head) -------------------------------
    out = input_resizer_forward(x, target_size, head_w, head_b)
    jax.block_until_ready(out)
    assert out.shape == (N, num_classes)
    print("KERNEL_OK")
</pallas_src>

<mosaic_0001>
module attributes {stable_mosaic.version = 11 : i64} {
  func.func @_resize_kernel(%arg0: i32, %arg1: memref<32x16xf32, #tpu.memory_space<vmem>>, %arg2: memref<16x32xf32, #tpu.memory_space<vmem>>, %arg3: memref<128x16xf32, #tpu.memory_space<vmem>>, %arg4: memref<256x32xf32, #tpu.memory_space<vmem>>, %arg5: memref<128x32xf32, #tpu.memory_space<vmem>>) attributes {dimension_semantics = [#tpu.dimension_semantics<parallel>], iteration_bounds = array<i64: 1>, scalar_prefetch = 0 : i64, scratch_operands = 1 : i64, tpu.core_type = #tpu.core_type<tc>, window_params = [{pipeline_mode = #tpu.pipeline_mode<synchronous>, transform_indices = @transform_0, window_bounds = array<i64: 32, 16>}, {pipeline_mode = #tpu.pipeline_mode<synchronous>, transform_indices = @transform_1, window_bounds = array<i64: 16, 32>}, {transform_indices = @transform_2, window_bounds = array<i64: 128, 16>}, {transform_indices = @transform_3, window_bounds = array<i64: 256, 32>}]} {
    %c0 = arith.constant 0 : index
    %c0_0 = arith.constant 0 : index
    %0 = vector.load %arg1[%c0, %c0_0] : memref<32x16xf32, #tpu.memory_space<vmem>>, vector<32x16xf32>
    %c0_1 = arith.constant 0 : index
    %c0_2 = arith.constant 0 : index
    %1 = vector.load %arg3[%c0_1, %c0_2] : memref<128x16xf32, #tpu.memory_space<vmem>>, vector<128x16xf32>
    %c0_3 = arith.constant 0 : index
    %c0_4 = arith.constant 0 : index
    %2 = vector.load %arg2[%c0_3, %c0_4] : memref<16x32xf32, #tpu.memory_space<vmem>>, vector<16x32xf32>
    %cst = arith.constant dense<0.000000e+00> : vector<128x32xf32>
    %3 = tpu.matmul %1, %2, %cst {dimension_numbers = #tpu.dot_dimension_numbers<[1], [0], [0], [1], [0, 0, 1, 1], [], []>} : vector<128x16xf32>, vector<16x32xf32>, vector<128x32xf32> -> vector<128x32xf32>
    %c0_5 = arith.constant 0 : index
    %c0_6 = arith.constant 0 : index
    %4 = vector.load %arg5[%c0_5, %c0_6] : memref<128x32xf32, #tpu.memory_space<vmem>>, vector<128x32xf32>
    tpu.vector_store %arg5[%c0_5, %c0_6], %3 {strides = array<i32>} : memref<128x32xf32, #tpu.memory_space<vmem>>, vector<128x32xf32>,
    %c0_i32 = arith.constant 0 : i32
    %c16_i32 = arith.constant 16 : i32
    %5 = arith.muli %c0_i32, %c16_i32 : i32
    %6 = tpu.assume_multiple %5, 8 : i32
    %c32_i32 = arith.constant 32 : i32
    %7 = arith.muli %c0_i32, %c32_i32 : i32
    %8 = tpu.assume_multiple %7, 8 : i32
    %9 = arith.index_cast %6 : i32 to index
    %c0_7 = arith.constant 0 : index
    %10 = vector.load %arg5[%9, %c0_7] : memref<128x32xf32, #tpu.memory_space<vmem>>, vector<16x32xf32>
    %cst_8 = arith.constant dense<0.000000e+00> : vector<32x32xf32>
    %11 = tpu.matmul %0, %10, %cst_8 {dimension_numbers = #tpu.dot_dimension_numbers<[1], [0], [0], [1], [0, 0, 1, 1], [], []>} : vector<32x16xf32>, vector<16x32xf32>, vector<32x32xf32> -> vector<32x32xf32>
    %12 = arith.index_cast %8 : i32 to index
    %c0_9 = arith.constant 0 : index
    %13 = vector.load %arg4[%12, %c0_9] : memref<256x32xf32, #tpu.memory_space<vmem>>, vector<32x32xf32>
    tpu.vector_store %arg4[%12, %c0_9], %11 {strides = array<i32>} : memref<256x32xf32, #tpu.memory_space<vmem>>, vector<32x32xf32>,
    %c1_i32 = arith.constant 1 : i32
    %c16_i32_10 = arith.constant 16 : i32
    %14 = arith.muli %c1_i32, %c16_i32_10 : i32
    %15 = tpu.assume_multiple %14, 8 : i32
    %c32_i32_11 = arith.constant 32 : i32
    %16 = arith.muli %c1_i32, %c32_i32_11 : i32
    %17 = tpu.assume_multiple %16, 8 : i32
    %18 = arith.index_cast %15 : i32 to index
    %c0_12 = arith.constant 0 : index
    %19 = vector.load %arg5[%18, %c0_12] : memref<128x32xf32, #tpu.memory_space<vmem>>, vector<16x32xf32>
    %cst_13 = arith.constant dense<0.000000e+00> : vector<32x32xf32>
    %20 = tpu.matmul %0, %19, %cst_13 {dimension_numbers = #tpu.dot_dimension_numbers<[1], [0], [0], [1], [0, 0, 1, 1], [], []>} : vector<32x16xf32>, vector<16x32xf32>, vector<32x32xf32> -> vector<32x32xf32>
    %21 = arith.index_cast %17 : i32 to index
    %c0_14 = arith.constant 0 : index
    %22 = vector.load %arg4[%21, %c0_14] : memref<256x32xf32, #tpu.memory_space<vmem>>, vector<32x32xf32>
    tpu.vector_store %arg4[%21, %c0_14], %20 {strides = array<i32>} : memref<256x32xf32, #tpu.memory_space<vmem>>, vector<32x32xf32>,
    %c2_i32 = arith.constant 2 : i32
    %c16_i32_15 = arith.constant 16 : i32
    %23 = arith.muli %c2_i32, %c16_i32_15 : i32
    %24 = tpu.assume_multiple %23, 8 : i32
    %c32_i32_16 = arith.constant 32 : i32
    %25 = arith.muli %c2_i32, %c32_i32_16 : i32
    %26 = tpu.assume_multiple %25, 8 : i32
    %27 = arith.index_cast %24 : i32 to index
    %c0_17 = arith.constant 0 : index
    %28 = vector.load %arg5[%27, %c0_17] : memref<128x32xf32, #tpu.memory_space<vmem>>, vector<16x32xf32>
    %cst_18 = arith.constant dense<0.000000e+00> : vector<32x32xf32>
    %29 = tpu.matmul %0, %28, %cst_18 {dimension_numbers = #tpu.dot_dimension_numbers<[1], [0], [0], [1], [0, 0, 1, 1], [], []>} : vector<32x16xf32>, vector<16x32xf32>, vector<32x32xf32> -> vector<32x32xf32>
    %30 = arith.index_cast %26 : i32 to index
    %c0_19 = arith.constant 0 : index
    %31 = vector.load %arg4[%30, %c0_19] : memref<256x32xf32, #tpu.memory_space<vmem>>, vector<32x32xf32>
    tpu.vector_store %arg4[%30, %c0_19], %29 {strides = array<i32>} : memref<256x32xf32, #tpu.memory_space<vmem>>, vector<32x32xf32>,
    %c3_i32 = arith.constant 3 : i32
    %c16_i32_20 = arith.constant 16 : i32
    %32 = arith.muli %c3_i32, %c16_i32_20 : i32
    %33 = tpu.assume_multiple %32, 8 : i32
    %c32_i32_21 = arith.constant 32 : i32
    %34 = arith.muli %c3_i32, %c32_i32_21 : i32
    %35 = tpu.assume_multiple %34, 8 : i32
    %36 = arith.index_cast %33 : i32 to index
    %c0_22 = arith.constant 0 : index
    %37 = vector.load %arg5[%36, %c0_22] : memref<128x32xf32, #tpu.memory_space<vmem>>, vector<16x32xf32>
    %cst_23 = arith.constant dense<0.000000e+00> : vector<32x32xf32>
    %38 = tpu.matmul %0, %37, %cst_23 {dimension_numbers = #tpu.dot_dimension_numbers<[1], [0], [0], [1], [0, 0, 1, 1], [], []>} : vector<32x16xf32>, vector<16x32xf32>, vector<32x32xf32> -> vector<32x32xf32>
    %39 = arith.index_cast %35 : i32 to index
    %c0_24 = arith.constant 0 : index
    %40 = vector.load %arg4[%39, %c0_24] : memref<256x32xf32, #tpu.memory_space<vmem>>, vector<32x32xf32>
    tpu.vector_store %arg4[%39, %c0_24], %38 {strides = array<i32>} : memref<256x32xf32, #tpu.memory_space<vmem>>, vector<32x32xf32>,
    %c4_i32 = arith.constant 4 : i32
    %c16_i32_25 = arith.constant 16 : i32
    %41 = arith.muli %c4_i32, %c16_i32_25 : i32
    %42 = tpu.assume_multiple %41, 8 : i32
    %c32_i32_26 = arith.constant 32 : i32
    %43 = arith.muli %c4_i32, %c32_i32_26 : i32
    %44 = tpu.assume_multiple %43, 8 : i32
    %45 = arith.index_cast %42 : i32 to index
    %c0_27 = arith.constant 0 : index
    %46 = vector.load %arg5[%45, %c0_27] : memref<128x32xf32, #tpu.memory_space<vmem>>, vector<16x32xf32>
    %cst_28 = arith.constant dense<0.000000e+00> : vector<32x32xf32>
    %47 = tpu.matmul %0, %46, %cst_28 {dimension_numbers = #tpu.dot_dimension_numbers<[1], [0], [0], [1], [0, 0, 1, 1], [], []>} : vector<32x16xf32>, vector<16x32xf32>, vector<32x32xf32> -> vector<32x32xf32>
    %48 = arith.index_cast %44 : i32 to index
    %c0_29 = arith.constant 0 : index
    %49 = vector.load %arg4[%48, %c0_29] : memref<256x32xf32, #tpu.memory_space<vmem>>, vector<32x32xf32>
    tpu.vector_store %arg4[%48, %c0_29], %47 {strides = array<i32>} : memref<256x32xf32, #tpu.memory_space<vmem>>, vector<32x32xf32>,
    %c5_i32 = arith.constant 5 : i32
    %c16_i32_30 = arith.constant 16 : i32
    %50 = arith.muli %c5_i32, %c16_i32_30 : i32
    %51 = tpu.assume_multiple %50, 8 : i32
    %c32_i32_31 = arith.constant 32 : i32
    %52 = arith.muli %c5_i32, %c32_i32_31 : i32
    %53 = tpu.assume_multiple %52, 8 : i32
    %54 = arith.index_cast %51 : i32 to index
    %c0_32 = arith.constant 0 : index
    %55 = vector.load %arg5[%54, %c0_32] : memref<128x32xf32, #tpu.memory_space<vmem>>, vector<16x32xf32>
    %cst_33 = arith.constant dense<0.000000e+00> : vector<32x32xf32>
    %56 = tpu.matmul %0, %55, %cst_33 {dimension_numbers = #tpu.dot_dimension_numbers<[1], [0], [0], [1], [0, 0, 1, 1], [], []>} : vector<32x16xf32>, vector<16x32xf32>, vector<32x32xf32> -> vector<32x32xf32>
    %57 = arith.index_cast %53 : i32 to index
    %c0_34 = arith.constant 0 : index
    %58 = vector.load %arg4[%57, %c0_34] : memref<256x32xf32, #tpu.memory_space<vmem>>, vector<32x32xf32>
    tpu.vector_store %arg4[%57, %c0_34], %56 {strides = array<i32>} : memref<256x32xf32, #tpu.memory_space<vmem>>, vector<32x32xf32>,
    %c6_i32 = arith.constant 6 : i32
    %c16_i32_35 = arith.constant 16 : i32
    %59 = arith.muli %c6_i32, %c16_i32_35 : i32
    %60 = tpu.assume_multiple %59, 8 : i32
    %c32_i32_36 = arith.constant 32 : i32
    %61 = arith.muli %c6_i32, %c32_i32_36 : i32
    %62 = tpu.assume_multiple %61, 8 : i32
    %63 = arith.index_cast %60 : i32 to index
    %c0_37 = arith.constant 0 : index
    %64 = vector.load %arg5[%63, %c0_37] : memref<128x32xf32, #tpu.memory_space<vmem>>, vector<16x32xf32>
    %cst_38 = arith.constant dense<0.000000e+00> : vector<32x32xf32>
    %65 = tpu.matmul %0, %64, %cst_38 {dimension_numbers = #tpu.dot_dimension_numbers<[1], [0], [0], [1], [0, 0, 1, 1], [], []>} : vector<32x16xf32>, vector<16x32xf32>, vector<32x32xf32> -> vector<32x32xf32>
    %66 = arith.index_cast %62 : i32 to index
    %c0_39 = arith.constant 0 : index
    %67 = vector.load %arg4[%66, %c0_39] : memref<256x32xf32, #tpu.memory_space<vmem>>, vector<32x32xf32>
    tpu.vector_store %arg4[%66, %c0_39], %65 {strides = array<i32>} : memref<256x32xf32, #tpu.memory_space<vmem>>, vector<32x32xf32>,
    %c7_i32 = arith.constant 7 : i32
    %c16_i32_40 = arith.constant 16 : i32
    %68 = arith.muli %c7_i32, %c16_i32_40 : i32
    %69 = tpu.assume_multiple %68, 8 : i32
    %c32_i32_41 = arith.constant 32 : i32
    %70 = arith.muli %c7_i32, %c32_i32_41 : i32
    %71 = tpu.assume_multiple %70, 8 : i32
    %72 = arith.index_cast %69 : i32 to index
    %c0_42 = arith.constant 0 : index
    %73 = vector.load %arg5[%72, %c0_42] : memref<128x32xf32, #tpu.memory_space<vmem>>, vector<16x32xf32>
    %cst_43 = arith.constant dense<0.000000e+00> : vector<32x32xf32>
    %74 = tpu.matmul %0, %73, %cst_43 {dimension_numbers = #tpu.dot_dimension_numbers<[1], [0], [0], [1], [0, 0, 1, 1], [], []>} : vector<32x16xf32>, vector<16x32xf32>, vector<32x32xf32> -> vector<32x32xf32>
    %75 = arith.index_cast %71 : i32 to index
    %c0_44 = arith.constant 0 : index
    %76 = vector.load %arg4[%75, %c0_44] : memref<256x32xf32, #tpu.memory_space<vmem>>, vector<32x32xf32>
    tpu.vector_store %arg4[%75, %c0_44], %74 {strides = array<i32>} : memref<256x32xf32, #tpu.memory_space<vmem>>, vector<32x32xf32>,
    %c8_i32 = arith.constant 8 : i32
    return
  }
  func.func @transform_0(%arg0: i32) -> (i32, i32) {
    %c0_i32 = arith.constant 0 : i32
    %c0_i32_0 = arith.constant 0 : i32
    %c0_i32_1 = arith.constant 0 : i32
    return %c0_i32, %c0_i32_0 : i32, i32
  }
  func.func @transform_1(%arg0: i32) -> (i32, i32) {
    %c0_i32 = arith.constant 0 : i32
    %c0_i32_0 = arith.constant 0 : i32
    %c0_i32_1 = arith.constant 0 : i32
    return %c0_i32, %c0_i32_0 : i32, i32
  }
  func.func @transform_2(%arg0: i32) -> (i32, i32) {
    %c0_i32 = arith.constant 0 : i32
    %c0_i32_0 = arith.constant 0 : i32
    return %arg0, %c0_i32 : i32, i32
  }
  func.func @transform_3(%arg0: i32) -> (i32, i32) {
    %c0_i32 = arith.constant 0 : i32
    %c0_i32_0 = arith.constant 0 : i32
    return %arg0, %c0_i32 : i32, i32
  }
}

</mosaic_0001>

<bundles_post_ra>
// kernel: tpu_custom_call.1
= control target key start
LH: loop header
LB: loop body
LE: loop exit
PB: predicated region body
PF: predicated region fallthrough
CT: control target
= control target key end

     0   :  { %vm36_vm0 = vcmask 130048   ;;  %vm230_vm1 = vcmask 261120   ;;  %s1609_s1 = inlined_call_operand.vmem [shape: f32[16,32], index: 1, kind: input, shape index: {}]   ;;  %s1610_s2 = inlined_call_operand.vmem [shape: f32[128,16], index: 2, kind: input, shape index: {}]   ;;  %s1611_s0 = inlined_call_operand.vmem [shape: f32[32,16], index: 0, kind: input, shape index: {}]   ;;  %s1612_s3 = inlined_call_operand.vmem [shape: f32[256,32], index: 3, kind: output, shape index: {}]  }
   0x1   :  { %v34_v0 = vld [vmem:[%s1609_s1] sm:$0xff]  ;;  %v35_v1 = vld [vmem:[%s1609_s1 + $0x8] sm:$0xff]  ;;  %v20_v5 = vld [vmem:[%s1610_s2 + $0x10] sm:$0xff] }
   0x2   :  { %v18_v2 = vld [vmem:[%s1610_s2] sm:$0xff]  ;;  %v1255_v3 = vpack.c.bf16 %v35_v1, %v34_v0  ;;  %v19_v4 = vld [vmem:[%s1610_s2 + $0x8] sm:$0xff]  ;;  %v21_v6 = vld [vmem:[%s1610_s2 + $0x18] sm:$0xff] }
   0x3   :  { %1151 = vmatprep.mubr.msk.f32.mxu0 %vm36_vm0, %v18_v2  ;;  %v22_v7 = vld [vmem:[%s1610_s2 + $0x20] sm:$0xff]  ;;  %v23_v8 = vld [vmem:[%s1610_s2 + $0x28] sm:$0xff]  ;;  %v24_v9 = vld [vmem:[%s1610_s2 + $0x30] sm:$0xff] }
   0x4   :  { %1256 = vmatprep.subr.bf16.mxu0 %v1255_v3  ;;  %v25_v10 = vld [vmem:[%s1610_s2 + $0x38] sm:$0xff]  ;;  %v26_v11 = vld [vmem:[%s1610_s2 + $0x40] sm:$0xff]  ;;  %v27_v12 = vld [vmem:[%s1610_s2 + $0x48] sm:$0xff] }
   0x5   :  { %1258 = vmatpush3.bf16.msra.mxu0 %v1255_v3  ;;  %v28_v13 = vld [vmem:[%s1610_s2 + $0x50] sm:$0xff]  ;;  %v29_v14 = vld [vmem:[%s1610_s2 + $0x58] sm:$0xff]  ;;  %v30_v15 = vld [vmem:[%s1610_s2 + $0x60] sm:$0xff] }
   0x6   :  { %v31_v16 = vld [vmem:[%s1610_s2 + $0x68] sm:$0xff]  ;;  %v32_v17 = vld [vmem:[%s1610_s2 + $0x70] sm:$0xff]  ;;  %v33_v18 = vld [vmem:[%s1610_s2 + $0x78] sm:$0xff] }
   0x7   :  { %v1384_v19 = vld [vmem:[%s1611_s0] sm:$0xff]  ;;  %v1400_v32 = vld [vmem:[%s1611_s0 + $0x8] sm:$0xff]  ;;  %v1406_v35 = vld [vmem:[%s1611_s0 + $0x10] sm:$0xff] }
   0x8   :  { %1152 = vmatmul.mubr.msk.f32.vlgmr.msra.gmra.mrb[0].mxu0 %vm36_vm0, %v19_v4  ;;  %1179 = vmatprep.mubr.msk.f32.mxu1 %vm36_vm0, %v1384_v19  ;;  %v1416_v39 = vld [vmem:[%s1611_s0 + $0x18] sm:$0xff] }
   0x9   :  { %1154 = vmatprep.mubr.msk.f32.mxu0 %vm36_vm0, %v20_v5 }
   0xc   :  { %1155 = vmatmul.mubr.msk.f32.gmra.mrb[2].mxu0 %vm36_vm0, %v21_v6 }
   0xd   :  { %1157 = vmatprep.mubr.msk.f32.mxu0 %vm36_vm0, %v22_v7 }
  0x10   :  { %1158 = vmatmul.mubr.msk.f32.gmra.mrb[4].mxu0 %vm36_vm0, %v23_v8 }
  0x11   :  { %1160 = vmatprep.mubr.msk.f32.mxu0 %vm36_vm0, %v24_v9 }
  0x14   :  { %1161 = vmatmul.mubr.msk.f32.gmra.mrb[6].mxu0 %vm36_vm0, %v25_v10 }
  0x15   :  { %1163 = vmatprep.mubr.msk.f32.mxu0 %vm36_vm0, %v26_v11 }
  0x18   :  { %1164 = vmatmul.mubr.msk.f32.gmra.mrb[8].mxu0 %vm36_vm0, %v27_v12 }
  0x19   :  { %1166 = vmatprep.mubr.msk.f32.mxu0 %vm36_vm0, %v28_v13 }
  0x1c   :  { %1167 = vmatmul.mubr.msk.f32.gmra.mrb[10].mxu0 %vm36_vm0, %v29_v14 }
  0x1d   :  { %1169 = vmatprep.mubr.msk.f32.mxu0 %vm36_vm0, %v30_v15 }
  0x20   :  { %1170 = vmatmul.mubr.msk.f32.gmra.mrb[12].mxu0 %vm36_vm0, %v31_v16 }
  0x21   :  { %1172 = vmatprep.mubr.msk.f32.mxu0 %vm36_vm0, %v32_v17 }
  0x24   :  { %1173 = vmatmul.mubr.msk.f32.gmra.mrb[14].mxu0 %vm36_vm0, %v33_v18 }
  0x25   :  { %1219 = vmatprep.mubr.msk.f32.mxu0 %vm36_vm0, %v1384_v19 }
  0xdb   :  { %v1153_v20 = vpop.f32.mrb[0].mxu0 }
  0xdc   :  { %232 = vst.msk [vmem:[#allocation2 + $0x8] sm:$0xff] %vm230_vm1, %v1153_v20  ;;  %v151_v21 = vpop.f32.mrb[1].mxu0 }
  0xdd   :  { %231 = vst.msk [vmem:[#allocation2] sm:$0xff] %vm230_vm1, %v151_v21 }
  0xdf   :  { %v1156_v22 = vpop.f32.mrb[2].mxu0 }
  0xe0   :  { %234 = vst.msk [vmem:[#allocation2 + $0x18] sm:$0xff] %vm230_vm1, %v1156_v22  ;;  %v161_v23 = vpop.f32.mrb[3].mxu0 }
  0xe1   :  { %233 = vst.msk [vmem:[#allocation2 + $0x10] sm:$0xff] %vm230_vm1, %v161_v23 }
  0xe3   :  { %v1159_v24 = vpop.f32.mrb[4].mxu0  ;;  %v248_v25 = vld [vmem:[#allocation2 + $0x8] sm:$0xff] }
  0xe4   :  { %236 = vst.msk [vmem:[#allocation2 + $0x28] sm:$0xff] %vm230_vm1, %v1159_v24  ;;  %v171_v26 = vpop.f32.mrb[5].mxu0  ;;  %v247_v27 = vld [vmem:[#allocation2] sm:$0xff] }
  0xe5   :  { %235 = vst.msk [vmem:[#allocation2 + $0x20] sm:$0xff] %vm230_vm1, %v171_v26  ;;  %v1259_v28 = vpack.c.bf16 %v248_v25, %v247_v27 }
  0xe7   :  { %v1162_v29 = vpop.f32.mrb[6].mxu0  ;;  %1260 = vmatprep.subr.bf16.mxu1 %v1259_v28  ;;  %v352_v30 = vld [vmem:[#allocation2 + $0x18] sm:$0xff] }
  0xe8   :  { %238 = vst.msk [vmem:[#allocation2 + $0x38] sm:$0xff] %vm230_vm1, %v1162_v29  ;;  %v181_v31 = vpop.f32.mrb[7].mxu0  ;;  %1262 = vmatpush3.bf16.msra.mxu1 %v1259_v28  ;;  %v351_v33 = vld [vmem:[#allocation2 + $0x10] sm:$0xff] }
  0xe9   :  { %237 = vst.msk [vmem:[#allocation2 + $0x30] sm:$0xff] %vm230_vm1, %v181_v31  ;;  %v1263_v34 = vpack.c.bf16 %v352_v30, %v351_v33 }
  0xeb   :  { %v1165_v36 = vpop.f32.mrb[8].mxu0  ;;  %1180 = vmatmul.mubr.msk.f32.vlgmr.msra.gmra.mrb[0].mxu1 %vm36_vm0, %v1400_v32  ;;  %1264 = vmatprep.subr.bf16.mxu1 %v1263_v34  ;;  %v445_v37 = vld [vmem:[#allocation2 + $0x28] sm:$0xff] }
  0xec   :  { %240 = vst.msk [vmem:[#allocation2 + $0x48] sm:$0xff] %vm230_vm1, %v1165_v36  ;;  %v191_v38 = vpop.f32.mrb[9].mxu0  ;;  %1266 = vmatpush3.bf16.msra.mxu1 %v1263_v34  ;;  %1182 = vmatprep.mubr.msk.f32.mxu1 %vm36_vm0, %v1406_v35  ;;  %v444_v40 = vld [vmem:[#allocation2 + $0x20] sm:$0xff] }
  0xed   :  { %239 = vst.msk [vmem:[#allocation2 + $0x40] sm:$0xff] %vm230_vm1, %v191_v38  ;;  %v1267_v41 = vpack.c.bf16 %v445_v37, %v444_v40 }
  0xef   :  { %1183 = vmatmul.mubr.msk.f32.gmra.mrb[2].mxu1 %vm36_vm0, %v1416_v39  ;;  %1268 = vmatprep.subr.bf16.mxu1 %v1267_v41  ;;  %v538_v42 = vld [vmem:[#allocation2 + $0x38] sm:$0xff]  ;;  %v1168_v43 = vpop.f32.mrb[10].mxu0 }
  0xf0   :  { %1189 = vmatprep.mubr.msk.f32.mxu1 %vm36_vm0, %v1384_v19  ;;  %v537_v44 = vld [vmem:[#allocation2 + $0x30] sm:$0xff]  ;;  %242 = vst.msk [vmem:[#allocation2 + $0x58] sm:$0xff] %vm230_vm1, %v1168_v43  ;;  %v201_v45 = vpop.f32.mrb[11].mxu0 }
  0xf1   :  { %v1271_v46 = vpack.c.bf16 %v538_v42, %v537_v44  ;;  %241 = vst.msk [vmem:[#allocation2 + $0x50] sm:$0xff] %vm230_vm1, %v201_v45 }
  0xf3   :  { %1190 = vmatmul.mubr.msk.f32.vlgmr.msra.gmra.mrb[4].mxu1 %vm36_vm0, %v1400_v32  ;;  %v631_v47 = vld [vmem:[#allocation2 + $0x48] sm:$0xff]  ;;  %v1171_v48 = vpop.f32.mrb[12].mxu0 }
  0xf4   :  { %1270 = vmatpush3.bf16.msra.mxu1 %v1267_v41  ;;  %1192 = vmatprep.mubr.msk.f32.mxu1 %vm36_vm0, %v1406_v35  ;;  %v630_v49 = vld [vmem:[#allocation2 + $0x40] sm:$0xff]  ;;  %244 = vst.msk [vmem:[#allocation2 + $0x68] sm:$0xff] %vm230_vm1, %v1171_v48  ;;  %v211_v50 = vpop.f32.mrb[13].mxu0 }
  0xf5   :  { %1272 = vmatprep.subr.bf16.mxu1 %v1271_v46  ;;  %v1275_v51 = vpack.c.bf16 %v631_v47, %v630_v49  ;;  %243 = vst.msk [vmem:[#allocation2 + $0x60] sm:$0xff] %vm230_vm1, %v211_v50 }
  0xf7   :  { %1193 = vmatmul.mubr.msk.f32.gmra.mrb[6].mxu1 %vm36_vm0, %v1416_v39  ;;  %1276 = vmatprep.subr.bf16.mxu0 %v1275_v51  ;;  %v1174_v52 = vpop.f32.mrb[14].mxu0  ;;  %v724_v53 = vld [vmem:[#allocation2 + $0x58] sm:$0xff] }
  0xf8   :  { %1278 = vmatpush3.bf16.msra.mxu0 %v1275_v51  ;;  %1199 = vmatprep.mubr.msk.f32.mxu1 %vm36_vm0, %v1384_v19  ;;  %246 = vst.msk [vmem:[#allocation2 + $0x78] sm:$0xff] %vm230_vm1, %v1174_v52  ;;  %v221_v54 = vpop.f32.mrb[15].mxu0  ;;  %v723_v55 = vld [vmem:[#allocation2 + $0x50] sm:$0xff] }
  0xf9   :  { %245 = vst.msk [vmem:[#allocation2 + $0x70] sm:$0xff] %vm230_vm1, %v221_v54  ;;  %v1279_v56 = vpack.c.bf16 %v724_v53, %v723_v55 }
  0xfb   :  { %1200 = vmatmul.mubr.msk.f32.vlgmr.msra.gmra.mrb[8].mxu1 %vm36_vm0, %v1400_v32  ;;  %v817_v57 = vld [vmem:[#allocation2 + $0x68] sm:$0xff]  ;;  %1220 = vmatmul.mubr.msk.f32.vlgmr.msra.gmra.mrb[16].mxu0 %vm36_vm0, %v1400_v32 }
  0xfc   :  { %1274 = vmatpush3.bf16.msra.mxu1 %v1271_v46  ;;  %1202 = vmatprep.mubr.msk.f32.mxu1 %vm36_vm0, %v1406_v35  ;;  %v816_v58 = vld [vmem:[#allocation2 + $0x60] sm:$0xff] }
  0xfd   :  { %1280 = vmatprep.subr.bf16.mxu1 %v1279_v56  ;;  %v1283_v59 = vpack.c.bf16 %v817_v57, %v816_v58  ;;  %1222 = vmatprep.mubr.msk.f32.mxu0 %vm36_vm0, %v1406_v35 }
  0xff   :  { %1203 = vmatmul.mubr.msk.f32.gmra.mrb[10].mxu1 %vm36_vm0, %v1416_v39  ;;  %1284 = vmatprep.subr.bf16.mxu0 %v1283_v59  ;;  %v910_v60 = vld [vmem:[#allocation2 + $0x78] sm:$0xff] }
 0x100   :  { %1209 = vmatprep.mubr.msk.f32.mxu1 %vm36_vm0, %v1384_v19  ;;  %1286 = vmatpush3.bf16.msra.mxu0 %v1283_v59  ;;  %v909_v61 = vld [vmem:[#allocation2 + $0x70] sm:$0xff] }
 0x101   :  { %v1287_v62 = vpack.c.bf16 %v910_v60, %v909_v61  ;;  %1223 = vmatmul.mubr.msk.f32.gmra.mrb[18].mxu0 %vm36_vm0, %v1416_v39 }
 0x102   :  { %1239 = vmatprep.mubr.msk.f32.mxu0 %vm36_vm0, %v1384_v19 }
 0x103   :  { %1210 = vmatmul.mubr.msk.f32.vlgmr.msra.gmra.mrb[12].mxu1 %vm36_vm0, %v1400_v32 }
 0x104   :  { %1282 = vmatpush3.bf16.msra.mxu1 %v1279_v56  ;;  %1212 = vmatprep.mubr.msk.f32.mxu1 %vm36_vm0, %v1406_v35 }
 0x105   :  { %1288 = vmatprep.subr.bf16.mxu1 %v1287_v62  ;;  %1240 = vmatmul.mubr.msk.f32.vlgmr.msra.gmra.mrb[20].mxu0 %vm36_vm0, %v1400_v32 }
 0x106   :  { %1242 = vmatprep.mubr.msk.f32.mxu0 %vm36_vm0, %v1406_v35 }
 0x107   :  { %1213 = vmatmul.mubr.msk.f32.gmra.mrb[14].mxu1 %vm36_vm0, %v1416_v39 }
 0x108   :  { %1229 = vmatprep.mubr.msk.f32.mxu1 %vm36_vm0, %v1384_v19 }
 0x109   :  { %1243 = vmatmul.mubr.msk.f32.gmra.mrb[22].mxu0 %vm36_vm0, %v1416_v39 }
 0x10b   :  { %1230 = vmatmul.mubr.msk.f32.vlgmr.msra.gmra.mrb[16].mxu1 %vm36_vm0, %v1400_v32 }
 0x10c   :  { %1290 = vmatpush3.bf16.msra.mxu1 %v1287_v62  ;;  %1232 = vmatprep.mubr.msk.f32.mxu1 %vm36_vm0, %v1406_v35 }
 0x10f   :  { %1233 = vmatmul.mubr.msk.f32.gmra.mrb[18].mxu1 %vm36_vm0, %v1416_v39 }
 0x110   :  { %1249 = vmatprep.mubr.msk.f32.mxu1 %vm36_vm0, %v1384_v19 }
 0x113   :  { %1250 = vmatmul.mubr.msk.f32.vlgmr.msra.gmra.mrb[20].mxu1 %vm36_vm0, %v1400_v32 }
 0x114   :  { %1252 = vmatprep.mubr.msk.f32.mxu1 %vm36_vm0, %v1406_v35 }
 0x117   :  { %1253 = vmatmul.mubr.msk.f32.gmra.mrb[22].mxu1 %vm36_vm0, %v1416_v39 }
 0x1be   :  { %v1181_v63 = vpop.f32.mrb[0].mxu1 }
 0x1bf   :  { %347 = vst.msk [vmem:[%s1612_s3 + $0x8] sm:$0xff] %vm230_vm1, %v1181_v63  ;;  %v327_v0 = vpop.f32.mrb[1].mxu1 }
 0x1c0   :  { %346 = vst.msk [vmem:[%s1612_s3] sm:$0xff] %vm230_vm1, %v327_v0 }
 0x1c2   :  { %v1184_v1 = vpop.f32.mrb[2].mxu1 }
 0x1c3   :  { %349 = vst.msk [vmem:[%s1612_s3 + $0x18] sm:$0xff] %vm230_vm1, %v1184_v1  ;;  %v337_v2 = vpop.f32.mrb[3].mxu1 }
 0x1c4   :  { %348 = vst.msk [vmem:[%s1612_s3 + $0x10] sm:$0xff] %vm230_vm1, %v337_v2 }
 0x1c6   :  { %v1191_v3 = vpop.f32.mrb[4].mxu1 }
 0x1c7   :  { %1030 = vst.msk [vmem:[%s1612_s3 + $0x28] sm:$0xff] %vm230_vm1, %v1191_v3  ;;  %v419_v4 = vpop.f32.mrb[5].mxu1 }
 0x1c8   :  { %1029 = vst.msk [vmem:[%s1612_s3 + $0x20] sm:$0xff] %vm230_vm1, %v419_v4 }
 0x1ca   :  { %v1194_v5 = vpop.f32.mrb[6].mxu1 }
 0x1cb   :  { %1032 = vst.msk [vmem:[%s1612_s3 + $0x38] sm:$0xff] %vm230_vm1, %v1194_v5  ;;  %v429_v6 = vpop.f32.mrb[7].mxu1 }
 0x1cc   :  { %1031 = vst.msk [vmem:[%s1612_s3 + $0x30] sm:$0xff] %vm230_vm1, %v429_v6 }
 0x1ce   :  { %v1201_v7 = vpop.f32.mrb[8].mxu1  ;;  %v1221_v8 = vpop.f32.mrb[16].mxu0 }
 0x1cf   :  { %1038 = vst.msk [vmem:[%s1612_s3 + $0x48] sm:$0xff] %vm230_vm1, %v1201_v7  ;;  %v512_v9 = vpop.f32.mrb[9].mxu1  ;;  %1054 = vst.msk [vmem:[%s1612_s3 + $0x88] sm:$0xff] %vm230_vm1, %v1221_v8  ;;  %v698_v10 = vpop.f32.mrb[17].mxu0 }
 0x1d0   :  { %1037 = vst.msk [vmem:[%s1612_s3 + $0x40] sm:$0xff] %vm230_vm1, %v512_v9  ;;  %1053 = vst.msk [vmem:[%s1612_s3 + $0x80] sm:$0xff] %vm230_vm1, %v698_v10 }
 0x1d2   :  { %v1204_v11 = vpop.f32.mrb[10].mxu1 }
 0x1d3   :  { %1040 = vst.msk [vmem:[%s1612_s3 + $0x58] sm:$0xff] %vm230_vm1, %v1204_v11  ;;  %v522_v12 = vpop.f32.mrb[11].mxu1 }
 0x1d4   :  { %1039 = vst.msk [vmem:[%s1612_s3 + $0x50] sm:$0xff] %vm230_vm1, %v522_v12  ;;  %v1224_v13 = vpop.f32.mrb[18].mxu0 }
 0x1d5   :  { %1056 = vst.msk [vmem:[%s1612_s3 + $0x98] sm:$0xff] %vm230_vm1, %v1224_v13  ;;  %v708_v14 = vpop.f32.mrb[19].mxu0 }
 0x1d6   :  { %v1211_v15 = vpop.f32.mrb[12].mxu1  ;;  %1055 = vst.msk [vmem:[%s1612_s3 + $0x90] sm:$0xff] %vm230_vm1, %v708_v14 }
 0x1d7   :  { %1046 = vst.msk [vmem:[%s1612_s3 + $0x68] sm:$0xff] %vm230_vm1, %v1211_v15  ;;  %v605_v16 = vpop.f32.mrb[13].mxu1 }
 0x1d8   :  { %1045 = vst.msk [vmem:[%s1612_s3 + $0x60] sm:$0xff] %vm230_vm1, %v605_v16  ;;  %v1241_v17 = vpop.f32.mrb[20].mxu0 }
 0x1d9   :  { %1070 = vst.msk [vmem:[%s1612_s3 + $0xc8] sm:$0xff] %vm230_vm1, %v1241_v17  ;;  %v884_v18 = vpop.f32.mrb[21].mxu0 }
 0x1da   :  { %v1214_v19 = vpop.f32.mrb[14].mxu1  ;;  %1069 = vst.msk [vmem:[%s1612_s3 + $0xc0] sm:$0xff] %vm230_vm1, %v884_v18 }
 0x1db   :  { %1048 = vst.msk [vmem:[%s1612_s3 + $0x78] sm:$0xff] %vm230_vm1, %v1214_v19  ;;  %v615_v20 = vpop.f32.mrb[15].mxu1 }
 0x1dc   :  { %1047 = vst.msk [vmem:[%s1612_s3 + $0x70] sm:$0xff] %vm230_vm1, %v615_v20  ;;  %v1244_v21 = vpop.f32.mrb[22].mxu0 }
 0x1dd   :  { %1072 = vst.msk [vmem:[%s1612_s3 + $0xd8] sm:$0xff] %vm230_vm1, %v1244_v21  ;;  %v894_v22 = vpop.f32.mrb[23].mxu0 }
 0x1de   :  { %v1231_v23 = vpop.f32.mrb[16].mxu1  ;;  %1071 = vst.msk [vmem:[%s1612_s3 + $0xd0] sm:$0xff] %vm230_vm1, %v894_v22 }
 0x1df   :  { %1062 = vst.msk [vmem:[%s1612_s3 + $0xa8] sm:$0xff] %vm230_vm1, %v1231_v23  ;;  %v791_v24 = vpop.f32.mrb[17].mxu1 }
 0x1e0   :  { %1061 = vst.msk [vmem:[%s1612_s3 + $0xa0] sm:$0xff] %vm230_vm1, %v791_v24 }
 0x1e2   :  { %v1234_v25 = vpop.f32.mrb[18].mxu1 }
 0x1e3   :  { %1064 = vst.msk [vmem:[%s1612_s3 + $0xb8] sm:$0xff] %vm230_vm1, %v1234_v25  ;;  %v801_v26 = vpop.f32.mrb[19].mxu1 }
 0x1e4   :  { %1063 = vst.msk [vmem:[%s1612_s3 + $0xb0] sm:$0xff] %vm230_vm1, %v801_v26 }
 0x1e6   :  { %v1251_v27 = vpop.f32.mrb[20].mxu1 }
 0x1e7   :  { %1078 = vst.msk [vmem:[%s1612_s3 + $0xe8] sm:$0xff] %vm230_vm1, %v1251_v27  ;;  %v977_v28 = vpop.f32.mrb[21].mxu1 }
 0x1e8   :  { %1077 = vst.msk [vmem:[%s1612_s3 + $0xe0] sm:$0xff] %vm230_vm1, %v977_v28 }
 0x1ea   :  { %v1254_v29 = vpop.f32.mrb[22].mxu1 }
 0x1eb   :  { %1080 = vst.msk [vmem:[%s1612_s3 + $0xf8] sm:$0xff] %vm230_vm1, %v1254_v29  ;;  %v987_v30 = vpop.f32.mrb[23].mxu1 }
 0x1ec   :  { %1079 = vst.msk [vmem:[%s1612_s3 + $0xf0] sm:$0xff] %vm230_vm1, %v987_v30 }

</bundles_post_ra>
